<compile_context>
chip_gen: v7x
topology: tpu7x:2x2x1
jax: 0.10.0
libtpu: 0.0.40
codegen_flags: <defaults>
</compile_context>

<pallas_src>
import functools

import jax
import jax.numpy as jnp
from jax.experimental import pallas as pl
from jax.experimental.pallas import tpu as pltpu

LANES = 128
BLOCK_ROWS = 2048      # (2048, 128) f32 block = 1 MiB per input per buffer
NUM_CORES_MAX = 2      # split the reduction across TensorCores (v7x megacore)


def _bce_kernel(p_ref, t_ref, o_ref, acc_ref, *, steps_per_core,
                n_full_blocks, tail_valid):
    c = pl.program_id(0)                 # core (parallel) axis
    i = pl.program_id(1)                 # sequential reduction axis
    b = c * steps_per_core + i           # global block index (block-scale int)

    @pl.when(i == 0)
    def _init():
        acc_ref[...] = jnp.zeros_like(acc_ref)

    x = p_ref[...].astype(jnp.float32)
    y = t_ref[...].astype(jnp.float32)
    # Numerically stable BCE-with-logits (same formula PyTorch uses):
    #   max(x, 0) - x*y + log1p(exp(-|x|))
    loss = jnp.maximum(x, 0.0) - x * y + jnp.log1p(jnp.exp(-jnp.abs(x)))

    # Steady-state blocks: plain elementwise accumulate, no masking work.
    @pl.when(b < n_full_blocks)
    def _full_block():
        acc_ref[...] += loss

    # Only the single (possibly) partial block pays for the mask.  Padding /
    # Pallas-edge garbage beyond n_total is selected away (jnp.where is a
    # true select, so NaNs in the masked region are harmless).
    if tail_valid > 0:
        @pl.when(b == n_full_blocks)
        def _tail_block():
            row = jax.lax.broadcasted_iota(jnp.int32, loss.shape, 0)
            col = jax.lax.broadcasted_iota(jnp.int32, loss.shape, 1)
            idx = row * loss.shape[1] + col          # in-block element index
            acc_ref[...] += jnp.where(idx < tail_valid, loss, 0.0)

    # Blocks with b > n_full_blocks (only the overhang steps on the last
    # core) contribute nothing.

    @pl.when(i == steps_per_core - 1)
    def _finalize():
        o_ref[0, 0] = jnp.sum(acc_ref[...])


def bce_with_logits_mean(preds, targets):
    assert preds.shape == targets.shape
    n_total = int(preds.size)
    assert n_total > 0

    p_flat = preds.reshape(-1)
    t_flat = targets.reshape(-1)

    # Pad only up to the 128-lane width (<= 127 elements), never to a block.
    n_pad = (-n_total) % LANES
    if n_pad:
        p_flat = jnp.pad(p_flat, (0, n_pad))
        t_flat = jnp.pad(t_flat, (0, n_pad))

    rows = (n_total + n_pad) // LANES
    p2 = p_flat.reshape(rows, LANES)
    t2 = t_flat.reshape(rows, LANES)

    # Clamp block rows for small inputs; keep a multiple of 8 (sublane tile).
    block_rows = min(BLOCK_ROWS, ((rows + 7) // 8) * 8)
    block_elems = block_rows * LANES

    num_blocks = -(-rows // block_rows)
    num_cores = min(NUM_CORES_MAX, num_blocks)
    steps_per_core = -(-num_blocks // num_cores)

    # Static tail bookkeeping (avoids any element-scale index arithmetic in
    # the kernel, so no int32 overflow for very large inputs).
    n_full_blocks = n_total // block_elems
    tail_valid = n_total - n_full_blocks * block_elems

    kernel = functools.partial(
        _bce_kernel,
        steps_per_core=steps_per_core,
        n_full_blocks=n_full_blocks,
        tail_valid=tail_valid,
    )

    last_block = num_blocks - 1

    def in_map(c, i):
        # Clamp so overhang steps on the last core never DMA out of bounds;
        # their contribution is gated off in the kernel body.
        return (jnp.minimum(c * steps_per_core + i, last_block), 0)

    partials = pl.pallas_call(
        kernel,
        out_shape=jax.ShapeDtypeStruct((num_cores, 1), jnp.float32),
        grid_spec=pltpu.PrefetchScalarGridSpec(
            num_scalar_prefetch=0,
            grid=(num_cores, steps_per_core),
            in_specs=[
                pl.BlockSpec((block_rows, LANES), in_map),
                pl.BlockSpec((block_rows, LANES), in_map),
            ],
            out_specs=pl.BlockSpec(
                (1, 1), lambda c, i: (c, 0), memory_space=pltpu.SMEM
            ),
            scratch_shapes=[pltpu.VMEM((block_rows, LANES), jnp.float32)],
        ),
        compiler_params=pltpu.CompilerParams(
            dimension_semantics=("parallel", "arbitrary"),
        ),
    )(p2, t2)

    # Combine per-core partial sums and normalize (reduction='mean').
    return jnp.sum(partials) / jnp.float32(n_total)


def _reference(preds, targets):
    x = preds.astype(jnp.float32)
    y = targets.astype(jnp.float32)
    loss = jnp.maximum(x, 0.0) - x * y + jnp.log1p(jnp.exp(-jnp.abs(x)))
    return jnp.mean(loss)


if __name__ == "__main__":
    key = jax.random.PRNGKey(0)
    k1, k2 = jax.random.split(key)

    # Small NCHW-like shapes: batch=2, channels=4, spatial=16x16.
    shape = (2, 4, 16, 16)
    preds = jax.random.normal(k1, shape, dtype=jnp.float32)
    targets = (jax.random.uniform(k2, shape) > 0.5).astype(jnp.float32)

    loss = jax.block_until_ready(bce_with_logits_mean(preds, targets))
    ref = jax.block_until_ready(_reference(preds, targets))

    assert jnp.allclose(loss, ref, rtol=1e-5, atol=1e-6), (loss, ref)
    print("KERNEL_OK")
</pallas_src>

<mosaic_0001>
module attributes {stable_mosaic.version = 11 : i64} {
  func.func @_bce_kernel(%arg0: i32, %arg1: i32, %arg2: memref<16x128xf32, #tpu.memory_space<vmem>>, %arg3: memref<16x128xf32, #tpu.memory_space<vmem>>, %arg4: memref<1x1xf32, #tpu.memory_space<smem>>, %arg5: memref<16x128xf32, #tpu.memory_space<vmem>>) attributes {dimension_semantics = [#tpu.dimension_semantics<parallel>, #tpu.dimension_semantics<arbitrary>], iteration_bounds = array<i64: 1, 1>, scalar_prefetch = 0 : i64, scratch_operands = 1 : i64, tpu.core_type = #tpu.core_type<tc>, window_params = [{transform_indices = @transform_0, window_bounds = array<i64: 16, 128>}, {transform_indices = @transform_1, window_bounds = array<i64: 16, 128>}, {transform_indices = @transform_2, window_bounds = array<i64: 1, 1>}]} {
    %c1_i32 = arith.constant 1 : i32
    %0 = arith.muli %arg0, %c1_i32 : i32
    %1 = arith.addi %0, %arg1 : i32
    %c0_i32 = arith.constant 0 : i32
    %2 = arith.cmpi eq, %arg1, %c0_i32 : i32
    %3 = arith.extui %2 : i1 to i32
    %c0_i32_0 = arith.constant 0 : i32
    %4 = arith.cmpi ne, %3, %c0_i32_0 : i32
    scf.if %4 {
      %cst_9 = arith.constant 0.000000e+00 : f32
      %23 = vector.broadcast %cst_9 : f32 to vector<16x128xf32>
      %c0_10 = arith.constant 0 : index
      %c0_11 = arith.constant 0 : index
      %24 = vector.load %arg5[%c0_10, %c0_11] : memref<16x128xf32, #tpu.memory_space<vmem>>, vector<16x128xf32>
      tpu.vector_store %arg5[%c0_10, %c0_11], %23 {strides = array<i32>} : memref<16x128xf32, #tpu.memory_space<vmem>>, vector<16x128xf32>,
    } else {
    }
    %c0 = arith.constant 0 : index
    %c0_1 = arith.constant 0 : index
    %5 = vector.load %arg2[%c0, %c0_1] : memref<16x128xf32, #tpu.memory_space<vmem>>, vector<16x128xf32>
    %c0_2 = arith.constant 0 : index
    %c0_3 = arith.constant 0 : index
    %6 = vector.load %arg3[%c0_2, %c0_3] : memref<16x128xf32, #tpu.memory_space<vmem>>, vector<16x128xf32>
    %cst = arith.constant 0.000000e+00 : f32
    %7 = vector.broadcast %cst : f32 to vector<16x128xf32>
    %8 = arith.maximumf %5, %7 : vector<16x128xf32>
    %9 = arith.mulf %5, %6 : vector<16x128xf32>
    %10 = arith.subf %8, %9 : vector<16x128xf32>
    %11 = math.absf %5 : vector<16x128xf32>
    %cst_4 = arith.constant 0.000000e+00 : f32
    %12 = vector.broadcast %cst_4 : f32 to vector<16x128xf32>
    %13 = arith.subf %12, %11 : vector<16x128xf32>
    %14 = math.exp %13 : vector<16x128xf32>
    %15 = math.log1p %14 : vector<16x128xf32>
    %16 = arith.addf %10, %15 : vector<16x128xf32>
    %c1_i32_5 = arith.constant 1 : i32
    %17 = arith.cmpi slt, %1, %c1_i32_5 : i32
    %18 = arith.extui %17 : i1 to i32
    %c0_i32_6 = arith.constant 0 : i32
    %19 = arith.cmpi ne, %18, %c0_i32_6 : i32
    scf.if %19 {
      %c0_9 = arith.constant 0 : index
      %c0_10 = arith.constant 0 : index
      %23 = vector.load %arg5[%c0_9, %c0_10] : memref<16x128xf32, #tpu.memory_space<vmem>>, vector<16x128xf32>
      %24 = arith.addf %23, %16 : vector<16x128xf32>
      %c0_11 = arith.constant 0 : index
      %c0_12 = arith.constant 0 : index
      %25 = vector.load %arg5[%c0_11, %c0_12] : memref<16x128xf32, #tpu.memory_space<vmem>>, vector<16x128xf32>
      tpu.vector_store %arg5[%c0_11, %c0_12], %24 {strides = array<i32>} : memref<16x128xf32, #tpu.memory_space<vmem>>, vector<16x128xf32>,
    } else {
    }
    %c0_i32_7 = arith.constant 0 : i32
    %20 = arith.cmpi eq, %arg1, %c0_i32_7 : i32
    %21 = arith.extui %20 : i1 to i32
    %c0_i32_8 = arith.constant 0 : i32
    %22 = arith.cmpi ne, %21, %c0_i32_8 : i32
    scf.if %22 {
      %c0_9 = arith.constant 0 : index
      %c0_10 = arith.constant 0 : index
      %23 = vector.load %arg5[%c0_9, %c0_10] : memref<16x128xf32, #tpu.memory_space<vmem>>, vector<16x128xf32>
      %24 = vector.shape_cast %23 : vector<16x128xf32> to vector<1x16x128xf32>
      %cst_11 = arith.constant dense<0.000000e+00> : vector<1xf32>
      %25 = vector.multi_reduction <add>, %24, %cst_11 [1, 2] : vector<1x16x128xf32> to vector<1xf32>
      %26 = vector.shape_cast %25 : vector<1xf32> to vector<1x1x1xf32>
      %27 = vector.extract %26[0, 0, 0] : f32 from vector<1x1x1xf32>
      %c0_12 = arith.constant 0 : index
      %c0_13 = arith.constant 0 : index
      %28 = memref.load %arg4[%c0_12, %c0_13] : memref<1x1xf32, #tpu.memory_space<smem>>
      memref.store %27, %arg4[%c0_12, %c0_13] : memref<1x1xf32, #tpu.memory_space<smem>>
    } else {
    }
    return
  }
  func.func @transform_0(%arg0: i32, %arg1: i32) -> (i32, i32) {
    %c1_i32 = arith.constant 1 : i32
    %0 = arith.muli %arg0, %c1_i32 : i32
    %1 = arith.addi %0, %arg1 : i32
    %c0_i32 = arith.constant 0 : i32
    %2 = arith.minsi %1, %c0_i32 : i32
    %c0_i32_0 = arith.constant 0 : i32
    %c0_i32_1 = arith.constant 0 : i32
    return %2, %c0_i32_0 : i32, i32
  }
  func.func @transform_1(%arg0: i32, %arg1: i32) -> (i32, i32) {
    %c1_i32 = arith.constant 1 : i32
    %0 = arith.muli %arg0, %c1_i32 : i32
    %1 = arith.addi %0, %arg1 : i32
    %c0_i32 = arith.constant 0 : i32
    %2 = arith.minsi %1, %c0_i32 : i32
    %c0_i32_0 = arith.constant 0 : i32
    %c0_i32_1 = arith.constant 0 : i32
    return %2, %c0_i32_0 : i32, i32
  }
  func.func @transform_2(%arg0: i32, %arg1: i32) -> (i32, i32) {
    %c0_i32 = arith.constant 0 : i32
    %c0_i32_0 = arith.constant 0 : i32
    return %arg0, %c0_i32 : i32, i32
  }
}

</mosaic_0001>

<bundles_post_ra>
// kernel: tpu_custom_call.1
= control target key start
LH: loop header
LB: loop body
LE: loop exit
PB: predicated region body
PF: predicated region fallthrough
CT: control target
= control target key end

     0   :  { %7 = vsyncpa [#allocation4], 0  ;;  %s282_s0 = inlined_call_operand.hbm [shape: f32[16,128], index: 0, kind: input, shape index: {}]   ;;  %s283_s1 = inlined_call_operand.hbm [shape: f32[16,128], index: 1, kind: input, shape index: {}]   ;;  %s284_s2 = inlined_call_operand.hbm [shape: f32[1,1], index: 2, kind: output, shape index: {}]  }
   0x1   :  { %8 = vsyncpa [#allocation7], 0 }
   0x2   :  { %9 = vsyncpa [#allocation5], 0  ;;  %s226_s9 = smov [#allocation3]   ;;  %s166_s13 = scalar_lea.hbm %s282_s0, 256 }
   0x3   :  { %s21_s10 = sshll.u32 %s226_s9, 4  ;;  %p167_p0 = scmp.ne.s32.totalorder %s282_s0, %s166_s13  ;;  %s22_s10 = int_to_ptr.vmem [resolvable:$true] %s21_s10 }
   0x4   :  { %p170_p1 = scmp.lt.u32.totalorder %s166_s13, %s282_s0 }
   0x6   :  { %p172_p2 = pnand %p170_p1, %p167_p0 }
   0x8   :  { %175 = shalt.err (!%p172_p2)
}
   0x9   :  { %s176_s18 = scalar_lea.vmem %s22_s10, 256  ;;  %p181_p4 = scmp.lt.s32.totalorder %s22_s10, %s22_s10 }
   0xa   :  { %p177_p3 = scmp.ne.s32.totalorder %s22_s10, %s176_s18  ;;  %p182_p5 = scmp.lt.s32.totalorder %s176_s18, %s176_s18 }
   0xc   :  { %p183_p6 = por %p182_p5, %p181_p4 }
   0xe   :  { %p184_p7 = pnand %p183_p6, %p177_p3 }
  0x10   :  { %187 = shalt.err (!%p184_p7)
}
  0x11   :  { %s227_s19 = smov 128   ;;  %s228_s20 = smov 8  }
  0x12   :  { %27 = dma.hbm_to_vmem [thread:$0]  %s282_s0, 256, %s22_s10, [#allocation4], %s227_s19, %s227_s19, %s228_s20  }
  0x13   :  { %s229_s23 = smov [#allocation6]   ;;  %s188_s27 = scalar_lea.hbm %s283_s1, 256 }
  0x14   :  { %s39_s24 = sshll.u32 %s229_s23, 4  ;;  %p189_p8 = scmp.ne.s32.totalorder %s283_s1, %s188_s27  ;;  %s40_s24 = int_to_ptr.vmem [resolvable:$true] %s39_s24 }
  0x15   :  { %p192_p9 = scmp.lt.u32.totalorder %s188_s27, %s283_s1 }
  0x17   :  { %p194_p10 = pnand %p192_p9, %p189_p8 }
  0x19   :  { %197 = shalt.err (!%p194_p10)
}
  0x1a   :  { %s198_s4 = scalar_lea.vmem %s40_s24, 256  ;;  %p203_p12 = scmp.lt.s32.totalorder %s40_s24, %s40_s24 }
  0x1b   :  { %p199_p11 = scmp.ne.s32.totalorder %s40_s24, %s198_s4  ;;  %p204_p13 = scmp.lt.s32.totalorder %s198_s4, %s198_s4 }
  0x1d   :  { %p205_p0 = por %p204_p13, %p203_p12 }
  0x1f   :  { %p206_p1 = pnand %p205_p0, %p199_p11 }
  0x21   :  { %209 = shalt.err (!%p206_p1)
}
  0x22   :  { %45 = dma.hbm_to_vmem [thread:$0]  %s283_s1, 256, %s40_s24, [#allocation7], %s227_s19, %s227_s19, %s228_s20  }
  0x23   :  { %220 = dma.done.wait [#allocation4], 256  }
  0x24   :  { %221 = vsyncadd [#allocation4], 4294967040 }
  0x25   :  { %222 = dma.done.wait [#allocation7], 256  }
  0x26   :  { %223 = vsyncadd [#allocation7], 4294967040  ;;  %v67_v0 = vld [vmem:[#allocation3] sm:$0xff]  ;;  %v68_v1 = vld [vmem:[#allocation3 + $0x8] sm:$0xff]  ;;  %s210_s8 = scalar_lea.hbm %s284_s2, 16 }
  0x27   :  { %v77_v2 = vand.u32 2147483647, %v67_v0  ;;  %v78_v3 = vand.u32 2147483647, %v68_v1  ;;  %v69_v14 = vld [vmem:[#allocation6] sm:$0xff]  ;;  %v70_v15 = vld [vmem:[#allocation6 + $0x8] sm:$0xff]  ;;  %p211_p2 = scmp.ne.s32.totalorder %s284_s2, %s210_s8  ;;  %p214_p3 = scmp.lt.u32.totalorder %s210_s8, %s284_s2 }
  0x28   :  { %v71_v17 = vmax.f32 %v67_v0, 0.0  ;;  %v73_v18 = vmul.f32 %v69_v14, %v67_v0  ;;  %v72_v21 = vmax.f32 %v68_v1, 0.0  ;;  %v74_v22 = vmul.f32 %v70_v15, %v68_v1 }
  0x29   :  { %v79_v4 = vsub.f32 0.0, %v77_v2  ;;  %v80_v5 = vsub.f32 0.0, %v78_v3  ;;  %p216_p4 = pnand %p214_p3, %p211_p2 }
  0x2a   :  { %v75_v26 = vsub.f32 %v71_v17, %v73_v18  ;;  %v76_v29 = vsub.f32 %v72_v21, %v74_v22 }
  0x2b   :  { %v81_v6 = vmul.f32 1.442695, %v79_v4  ;;  %v83_v7 = vmul.f32 1.442695, %v80_v5 }
  0x2d   :  { %158 = vpow2.f32 %v81_v6 }
  0x2e   :  { %160 = vpow2.f32 %v83_v7 }
  0x37   :  { %v159_v8 = vpop.eup %158 }
  0x38   :  { %v161_v9 = vpop.eup %160  ;;  %v85_v10 = vadd.f32 1.0, %v159_v8  ;;  %v88_v12 = vmul.f32 -0.5, %v159_v8  ;;  %v91_v19 = vand.u32 2147483647, %v159_v8 }
  0x39   :  { %v94_v11 = vadd.f32 1.0, %v161_v9  ;;  %v97_v13 = vmul.f32 -0.5, %v161_v9  ;;  %v100_v23 = vand.u32 2147483647, %v161_v9 }
  0x3a   :  { %162 = vlog2.f32 %v85_v10  ;;  %v89_v16 = vadd.f32 1.0, %v88_v12  ;;  %vm92_vm0 = vcmp.lt.f32.partialorder %v91_v19, 0.0004427343 }
  0x3b   :  { %164 = vlog2.f32 %v94_v11  ;;  %v98_v20 = vadd.f32 1.0, %v97_v13  ;;  %vm101_vm1 = vcmp.lt.f32.partialorder %v100_v23, 0.0004427343 }
  0x3c   :  { %v90_v24 = vmul.f32 %v159_v8, %v89_v16 }
  0x3d   :  { %v99_v27 = vmul.f32 %v161_v9, %v98_v20 }
  0x44   :  { %v163_v25 = vpop.eup %162 }
  0x45   :  { %v165_v28 = vpop.eup %164  ;;  %v87_v30 = vmul.f32 0.6931472, %v163_v25 }
  0x46   :  { %v96_v31 = vmul.f32 0.6931472, %v165_v28 }
  0x47   :  { %v93_v32 = vsel %vm92_vm0, %v90_v24, %v87_v30 }
  0x48   :  { %v102_v33 = vsel %vm101_vm1, %v99_v27, %v96_v31  ;;  %v103_v34 = vadd.f32 %v93_v32, %v75_v26 }
  0x49   :  { %v104_v35 = vadd.f32 %v102_v33, %v76_v29 }
  0x4b   :  { %v120_v36 = vadd.f32 %v104_v35, %v103_v34 }
  0x4d   :  { %121 = vadd.xlane.f32.xlu0 %v120_v36 }
  0xda   :  { %v122_v37 = vpop.xlane.xlu0 %121 }
  0xdb   :  { %v123_v38 = vrot.slane %v122_v37, 4 }
  0xdd   :  { %v124_v39 = vadd.f32 %v123_v38, %v122_v37 }
  0xdf   :  { %v125_v40 = vrot.slane %v124_v39, 2 }
  0xe1   :  { %v126_v41 = vadd.f32 %v125_v40, %v124_v39 }
  0xe3   :  { %v127_v42 = vrot.slane %v126_v41, 1 }
  0xe5   :  { %v128_v43 = vadd.f32 %v127_v42, %v126_v41 }
  0xe7   :  { %151 = vpush %v128_v43 }
 0x118   :  { %s152_s1 = spop %151 }
 0x119   :  { %131 = sst [smem:[#allocation8]] %s152_s1 }
 0x11a   :  { %219 = shalt.err (!%p216_p4)
}
 0x11b   :  { %s230_s13 = smov [#allocation8]  }
 0x11c   :  { %139 = dma.smem_to_hbm %s230_s13, 16, %s284_s2, [#allocation5]  }
 0x11d   :  { %224 = dma.done.wait [#allocation5], 16  }
 0x11e   :  { %225 = vsyncadd [#allocation5], 4294967280 }
 0x11f   :  { %143 = sfence }
 0x120   :  { %144 = vsyncpa [#allocation4], 1 }
 0x121   :  { %145 = vsyncpa [#allocation7], 1 }
 0x122   :  { %146 = vsyncpa [#allocation5], 1 }

</bundles_post_ra>
